<compile_context>
chip_gen: v6e
topology: v6e:2x2x1
jax: 0.10.0
libtpu: 0.0.40
codegen_flags: <defaults>
</compile_context>

<pallas_src>
import functools
import math

import jax
import jax.numpy as jnp
from jax.experimental import pallas as pl
from jax.experimental.pallas import tpu as pltpu


def _prompt_kernel(x_ref, br_ref, e_ref, w_ref, o_ref, *, thr):
    x = x_ref[...]                                # (TR, C)   C = fold*D, input dtype
    w = w_ref[...]                                # (C, G)    G = fold*2K, kron(I_fold, Wcat^T)

    # Per-score gate: branch code (+1 u / -1 m / 0 padded) per folded row-slot,
    # broadcast over its 2K score lanes (with +1 on u-cols, -1 on m-cols) by a
    # tiny matmul.  sel > 0  <=>  this (row, prompt) pair belongs to the active branch.
    sel = jnp.dot(br_ref[...], e_ref[...],
                  preferred_element_type=jnp.float32)                       # (TR, G)

    # scores = sigmoid(x @ Wcat^T) in the folded layout (f32 logits on the MXU,
    # sigmoid on the EUP over lane-dense vregs).
    s = jax.nn.sigmoid(jnp.dot(x, w, preferred_element_type=jnp.float32))   # (TR, G)
    s = jnp.where(jnp.logical_and(s > thr, sel > 0.0), s, 0.0)

    # prompt add = scores @ Wcat   (== scores @ w^T, since w = kron(I, Wcat^T)).
    # scores are cast to the weight dtype for the MXU (exact for f32 models;
    # tiny divergence vs torch only if weights are bf16).
    add = jax.lax.dot_general(s.astype(w.dtype), w,
                              dimension_numbers=(((1,), (1,)), ((), ())),
                              preferred_element_type=jnp.float32)           # (TR, C)

    o_ref[...] = (x.astype(jnp.float32) + add).astype(o_ref.dtype)


def _round_up(x, m):
    return (x + m - 1) // m * m


def _vmem_bytes_estimate(tr, c, g, fold_pad, itemsize):
    io_blocks = tr * c * itemsize * 2                  # x block + out block
    io_blocks += tr * fold_pad * 4                     # branch block (f32)
    io_blocks += fold_pad * g * 4 + c * g * itemsize   # expand matrix + folded weights
    interm = tr * (2 * g + 3 * c) * 4                  # sel, scores, add, x_f32, out_f32
    return 2 * io_blocks + interm                      # x2: double-buffered pipeline


def _choose_tile(n_rows, c, g, fold, fold_pad, itemsize, target_rows):
    """Rows-per-tile of the folded array, and grid size."""
    tr = max(8, min(n_rows, max(1, target_rows // fold)))
    while _vmem_bytes_estimate(tr, c, g, fold_pad, itemsize) > (40 << 20) and tr > 8:
        tr = max(8, tr // 2)
    if tr >= n_rows:
        # Single block: no gratuitous grid split (pure overhead on 1-TC v5e/v6e).
        return n_rows, 1
    tr = _round_up(tr, 8)
    steps = pl.cdiv(n_rows, tr)
    if steps % 2:                      # balance v7x's two TensorCores ('parallel' axis)
        steps += 1
        tr = _round_up(pl.cdiv(n_rows, steps), 8)
        steps = pl.cdiv(n_rows, tr)
    return tr, steps


def attention_prompt_extrapolation(patches, u_prompt, m_prompt, *, s_mti, his_num,
                                   prompt_threshold, s_uti=None,
                                   target_tile_rows=32768):
    """patches: [B, N, P, D]; u_prompt/m_prompt: [K, D]; s_mti: masked node indices."""
    del s_uti   # read by the torch forward but never used there either
    B, N, P, D = patches.shape
    K = u_prompt.shape[0]
    M = B * N * P
    dtype = patches.dtype
    itemsize = jnp.dtype(dtype).itemsize

    # Fold `fold` consecutive rows into one 128-lane row (free contiguous reshape)
    # so loads/stores and all elementwise work are lane-dense even for small D.
    fold = 128 // D if (D < 128 and 128 % D == 0) else 1
    fold_pad = _round_up(fold, 8)              # contraction width of the gate expansion
    Mp = _round_up(M, fold)
    R = Mp // fold                             # folded rows
    C = fold * D                               # folded feature width
    G = fold * 2 * K                           # folded score width (u and m prompts)

    x2d = patches.reshape(M, D)
    if Mp != M:                                # rare tail pad so the fold reshape is legal
        x2d = jnp.pad(x2d, ((0, Mp - M), (0, 0)))
    xf = x2d.reshape(R, C)

    # Per-row branch selector: +1 -> u_prompt branch, -1 -> m_prompt branch, 0 -> pad.
    # TODO(synk): t_mti is realized as the contiguous range [his_num, P), exactly as the
    # torch module defines it; a non-contiguous t_mti would need an explicit patch mask.
    rows = jnp.arange(Mp, dtype=jnp.int32)
    n_idx = (rows // P) % N
    p_idx = rows % P
    node_is_m = jnp.zeros((N,), jnp.bool_).at[jnp.asarray(s_mti, jnp.int32)].set(True)
    row_is_u = jnp.logical_and(jnp.logical_not(node_is_m[n_idx]), p_idx < his_num)
    branch = jnp.where(rows < M, jnp.where(row_is_u, 1.0, -1.0), 0.0).astype(jnp.float32)
    branch = jnp.pad(branch.reshape(R, fold), ((0, 0), (0, fold_pad - fold)))    # (R, fold_pad)

    # One concatenated prompt table, folded block-diagonally: w = kron(I_fold, Wcat^T).
    w_cat = jnp.concatenate([u_prompt, m_prompt], axis=0)                        # (2K, D)
    w_fold = jnp.kron(jnp.eye(fold, dtype=jnp.float32), w_cat.T).astype(dtype)   # (C, G)

    # Gate-expansion matrix: row g broadcasts the branch code of folded slot g to its
    # 2K score lanes, +1 on u-prompt columns and -1 on m-prompt columns.
    col_sign = jnp.where(jnp.arange(2 * K) < K, 1.0, -1.0).astype(jnp.float32)
    expand = jnp.kron(jnp.eye(fold, dtype=jnp.float32), col_sign[None, :])        # (fold, G)
    expand = jnp.pad(expand, ((0, fold_pad - fold), (0, 0)))                      # (fold_pad, G)

    tile_rows, steps = _choose_tile(R, C, G, fold, fold_pad, itemsize, target_tile_rows)
    vmem_est = _vmem_bytes_estimate(tile_rows, C, G, fold_pad, itemsize)
    vmem_limit = int(min(56 << 20, max(2 * vmem_est, 16 << 20)))   # < v7x 64 MiB physical

    cost = pl.CostEstimate(
        flops=4 * M * D * 2 * K + 2 * R * fold_pad * G,
        transcendentals=M * 2 * K,
        bytes_accessed=2 * M * D * itemsize + R * fold_pad * 4
                       + C * G * itemsize + fold_pad * G * 4)

    kernel = functools.partial(_prompt_kernel, thr=float(prompt_threshold))

    out_f = pl.pallas_call(
        kernel,
        out_shape=jax.ShapeDtypeStruct((R, C), dtype),
        grid=(steps,),
        in_specs=[
            pl.BlockSpec((tile_rows, C), lambda i: (i, 0)),
            pl.BlockSpec((tile_rows, fold_pad), lambda i: (i, 0)),
            pl.BlockSpec((fold_pad, G), lambda i: (0, 0)),
            pl.BlockSpec((C, G), lambda i: (0, 0)),
        ],
        out_specs=pl.BlockSpec((tile_rows, C), lambda i: (i, 0)),
        compiler_params=pltpu.CompilerParams(
            dimension_semantics=("parallel",),
            vmem_limit_bytes=vmem_limit),
        cost_estimate=cost,
    )(xf, branch, expand, w_fold)

    # Un-fold (free reshape + leading-dim slice), no transpose.
    return out_f.reshape(Mp, D)[:M].reshape(B, N, P, D)


def _kaiming_uniform(key, shape, a=0.01):
    # nn.init.kaiming_uniform_(weight, nonlinearity='leaky_relu', mode='fan_in', a=0.01)
    fan_in = shape[1]
    gain = math.sqrt(2.0 / (1.0 + a * a))
    bound = gain * math.sqrt(3.0 / fan_in)
    return jax.random.uniform(key, shape, jnp.float32, -bound, bound)


def _reference(patches, wu, wm, s_mti, t_mti, thr):
    """Literal JAX transcription of the torch forward."""
    s_mti = jnp.asarray(s_mti, jnp.int32)
    t_mti = jnp.asarray(t_mti, jnp.int32)
    score = jax.nn.sigmoid(jnp.einsum('bnpd,kd->bnpk', patches, wu))
    score = score * (score > thr).astype(score.dtype)
    score = score.at[:, s_mti].set(0.0)
    score = score.at[:, :, t_mti].set(0.0)
    out = patches + jnp.einsum('bnpk,kd->bnpd', score, wu)
    score = jax.nn.sigmoid(jnp.einsum('bnpd,kd->bnpk', patches, wm))
    score = score * (score > thr).astype(score.dtype)
    copy = score.at[:, s_mti].set(0.0)
    copy = copy.at[:, :, t_mti].set(0.0)
    score = score - copy
    out = out + jnp.einsum('bnpk,kd->bnpd', score, wm)
    return out


if __name__ == "__main__":
    # cfg-implied small shapes: extrapolation => t_mti == [P-1] (last patch only)
    B, N = 2, 4                 # batch, num nodes
    his_num = 24                # history_patch
    P = his_num + 1             # num_patch (t_mti == [24] as the module asserts)
    D = 32                      # embed_dim
    K = 16                      # num_prompt
    thr = 0.5                   # prompt_threshold
    s_mti = [1, 3]              # masked node indices (zeroed in the u-prompt branch)
    s_uti = [0, 2]              # unmasked node indices (unused by the torch forward)

    key = jax.random.PRNGKey(0)
    k_x, k_u, k_m = jax.random.split(key, 3)

    patches = jax.random.normal(k_x, (B, N, P, D), jnp.float32)
    u_prompt = _kaiming_uniform(k_u, (K, D))
    m_prompt = _kaiming_uniform(k_m, (K, D))

    out = attention_prompt_extrapolation(
        patches, u_prompt, m_prompt,
        s_mti=s_mti, s_uti=s_uti,
        his_num=his_num, prompt_threshold=thr)
    out = jax.block_until_ready(out)

    ref = _reference(patches, u_prompt, m_prompt, s_mti,
                     list(range(his_num, P)), thr)
    assert out.shape == (B, N, P, D)
    assert jnp.allclose(out, ref, atol=1e-4, rtol=1e-4), "mismatch vs reference"

    print("KERNEL_OK")
</pallas_src>

<mosaic_0001>
module attributes {stable_mosaic.version = 11 : i64} {
  func.func @_prompt_kernel(%arg0: i32, %arg1: memref<50x128xf32, #tpu.memory_space<vmem>>, %arg2: memref<50x8xf32, #tpu.memory_space<vmem>>, %arg3: memref<8x128xf32, #tpu.memory_space<vmem>>, %arg4: memref<128x128xf32, #tpu.memory_space<vmem>>, %arg5: memref<50x128xf32, #tpu.memory_space<vmem>>) attributes {dimension_semantics = [#tpu.dimension_semantics<parallel>], iteration_bounds = array<i64: 1>, scalar_prefetch = 0 : i64, scratch_operands = 0 : i64, tpu.core_type = #tpu.core_type<tc>, window_params = [{transform_indices = @transform_0, window_bounds = array<i64: 50, 128>}, {transform_indices = @transform_1, window_bounds = array<i64: 50, 8>}, {pipeline_mode = #tpu.pipeline_mode<synchronous>, transform_indices = @transform_2, window_bounds = array<i64: 8, 128>}, {pipeline_mode = #tpu.pipeline_mode<synchronous>, transform_indices = @transform_3, window_bounds = array<i64: 128, 128>}, {transform_indices = @transform_4, window_bounds = array<i64: 50, 128>}]} {
    %c0 = arith.constant 0 : index
    %c0_0 = arith.constant 0 : index
    %0 = vector.load %arg1[%c0, %c0_0] : memref<50x128xf32, #tpu.memory_space<vmem>>, vector<50x128xf32>
    %c0_1 = arith.constant 0 : index
    %c0_2 = arith.constant 0 : index
    %1 = vector.load %arg4[%c0_1, %c0_2] : memref<128x128xf32, #tpu.memory_space<vmem>>, vector<128x128xf32>
    %c0_3 = arith.constant 0 : index
    %c0_4 = arith.constant 0 : index
    %2 = vector.load %arg2[%c0_3, %c0_4] : memref<50x8xf32, #tpu.memory_space<vmem>>, vector<50x8xf32>
    %c0_5 = arith.constant 0 : index
    %c0_6 = arith.constant 0 : index
    %3 = vector.load %arg3[%c0_5, %c0_6] : memref<8x128xf32, #tpu.memory_space<vmem>>, vector<8x128xf32>
    %cst = arith.constant dense<0.000000e+00> : vector<50x128xf32>
    %4 = tpu.matmul %2, %3, %cst {dimension_numbers = #tpu.dot_dimension_numbers<[1], [0], [0], [1], [0, 0, 1, 1], [], []>} : vector<50x8xf32>, vector<8x128xf32>, vector<50x128xf32> -> vector<50x128xf32>
    %cst_7 = arith.constant dense<0.000000e+00> : vector<50x128xf32>
    %5 = tpu.matmul %0, %1, %cst_7 {dimension_numbers = #tpu.dot_dimension_numbers<[1], [0], [0], [1], [0, 0, 1, 1], [], []>} : vector<50x128xf32>, vector<128x128xf32>, vector<50x128xf32> -> vector<50x128xf32>
    %6 = arith.negf %5 : vector<50x128xf32>
    %7 = math.exp %6 : vector<50x128xf32>
    %cst_8 = arith.constant 1.000000e+00 : f32
    %8 = vector.broadcast %cst_8 : f32 to vector<50x128xf32>
    %9 = arith.addf %8, %7 : vector<50x128xf32>
    %10 = arith.divf %8, %9 : vector<50x128xf32>
    %cst_9 = arith.constant 5.000000e-01 : f32
    %11 = vector.broadcast %cst_9 : f32 to vector<50x128xf32>
    %12 = arith.cmpf ogt, %10, %11 : vector<50x128xf32>
    %cst_10 = arith.constant 0.000000e+00 : f32
    %13 = vector.broadcast %cst_10 : f32 to vector<50x128xf32>
    %14 = arith.cmpf ogt, %4, %13 : vector<50x128xf32>
    %15 = arith.andi %12, %14 : vector<50x128xi1>
    %cst_11 = arith.constant 0.000000e+00 : f32
    %16 = vector.broadcast %cst_11 : f32 to vector<50x128xf32>
    %17 = arith.select %15, %10, %16 : vector<50x128xi1>, vector<50x128xf32>
    %cst_12 = arith.constant dense<0.000000e+00> : vector<50x128xf32>
    %18 = tpu.matmul %17, %1, %cst_12 {dimension_numbers = #tpu.dot_dimension_numbers<[1], [1], [0], [0], [0, 0, 1, 0], [], []>} : vector<50x128xf32>, vector<128x128xf32>, vector<50x128xf32> -> vector<50x128xf32>
    %19 = arith.addf %0, %18 : vector<50x128xf32>
    %c0_13 = arith.constant 0 : index
    %c0_14 = arith.constant 0 : index
    %20 = vector.load %arg5[%c0_13, %c0_14] : memref<50x128xf32, #tpu.memory_space<vmem>>, vector<50x128xf32>
    tpu.vector_store %arg5[%c0_13, %c0_14], %19 {strides = array<i32>} : memref<50x128xf32, #tpu.memory_space<vmem>>, vector<50x128xf32>,
    return
  }
  func.func @transform_0(%arg0: i32) -> (i32, i32) {
    %c0_i32 = arith.constant 0 : i32
    %c0_i32_0 = arith.constant 0 : i32
    return %arg0, %c0_i32 : i32, i32
  }
  func.func @transform_1(%arg0: i32) -> (i32, i32) {
    %c0_i32 = arith.constant 0 : i32
    %c0_i32_0 = arith.constant 0 : i32
    return %arg0, %c0_i32 : i32, i32
  }
  func.func @transform_2(%arg0: i32) -> (i32, i32) {
    %c0_i32 = arith.constant 0 : i32
    %c0_i32_0 = arith.constant 0 : i32
    %c0_i32_1 = arith.constant 0 : i32
    return %c0_i32, %c0_i32_0 : i32, i32
  }
  func.func @transform_3(%arg0: i32) -> (i32, i32) {
    %c0_i32 = arith.constant 0 : i32
    %c0_i32_0 = arith.constant 0 : i32
    %c0_i32_1 = arith.constant 0 : i32
    return %c0_i32, %c0_i32_0 : i32, i32
  }
  func.func @transform_4(%arg0: i32) -> (i32, i32) {
    %c0_i32 = arith.constant 0 : i32
    %c0_i32_0 = arith.constant 0 : i32
    return %arg0, %c0_i32 : i32, i32
  }
}

</mosaic_0001>

<bundles_post_ra>
// kernel: tpu_custom_call.1
= control target key start
LH: loop header
LB: loop body
LE: loop exit
PB: predicated region body
PF: predicated region fallthrough
CT: control target
= control target key end

     0   :  { %9 = vsyncpa [#allocation3], 0  ;;  %s984_s0 = inlined_call_operand.vmem [shape: f32[50,128], index: 0, kind: input, shape index: {}]   ;;  %s985_s1 = inlined_call_operand.vmem [shape: f32[50,8], index: 1, kind: input, shape index: {}]   ;;  %s986_s2 = inlined_call_operand.vmem [shape: f32[8,128], index: 2, kind: input, shape index: {}]   ;;  %s987_s3 = inlined_call_operand.hbm [shape: f32[128,128], index: 3, kind: input, shape index: {}]   ;;  %s988_s4 = inlined_call_operand.hbm [shape: f32[50,128], index: 4, kind: output, shape index: {}]  }
   0x1   :  { %10 = vsyncpa [#allocation4], 0  ;;  %s768_s15 = smov [#allocation2]  }
   0x2   :  { %s22_s16 = sshll.u32 %s768_s15, 4  ;;  %s23_s16 = int_to_ptr.vmem [resolvable:$true] %s22_s16 }
   0x3   :  { %s732_s17 = scalar_lea.vmem %s23_s16, 2048  ;;  %p737_p1 = scmp.lt.s32.totalorder %s23_s16, %s23_s16 }
   0x4   :  { %p733_p0 = scmp.ne.s32.totalorder %s23_s16, %s732_s17  ;;  %p738_p2 = scmp.lt.s32.totalorder %s732_s17, %s732_s17 }
   0x6   :  { %p739_p3 = por %p738_p2, %p737_p1 }
   0x8   :  { %p740_p4 = pnand %p739_p3, %p733_p0 }
   0xa   :  { %743 = shalt.err (!%p740_p4)
}
   0xb   :  { %s769_s18 = smov 128   ;;  %s770_s19 = smov 8  }
   0xc   :  { %28 = dma.hbm_to_vmem [thread:$0]  %s987_s3, 2048, %s23_s16, [#allocation3], %s769_s18, %s769_s18, %s770_s19  }
   0xd   :  { %764 = dma.done.wait [#allocation3], 2048  }
   0xe   :  { %765 = vsyncadd [#allocation3], 4294965248  ;;  %v771_v0 = vmov 0.0   ;;  %vm772_vm0 = vmmov 0   ;;  %vm63_vm1 = vcmask 64512   ;;  %v62_v1 = vld [vmem:[%s986_s2] sm:$0xff] }
   0xf   :  { %561 = vmatprep.subr.mxu1 %v771_v0  ;;  %563 = vmatprep.mubr.msk.f32.mxu1 %vm772_vm0, %v771_v0  ;;  %v55_v2 = vld [vmem:[%s985_s1] sm:$0xff]  ;;  %v54_v3 = vld [vmem:[#allocation2 + $0x78] sm:$0xff]  ;;  %v53_v4 = vld [vmem:[#allocation2 + $0x70] sm:$0xff] }
  0x10   :  { %637 = vmatprep.subr.mxu0 %v771_v0  ;;  %669 = vmatprep.mubr.msk.f32.mxu0 %vm772_vm0, %v771_v0  ;;  %v56_v5 = vld [vmem:[%s985_s1 + $0x8] sm:$0xff]  ;;  %v51_v7 = vld [vmem:[#allocation2 + $0x60] sm:$0xff]  ;;  %v57_v8 = vld [vmem:[%s985_s1 + $0x10] sm:$0xff] }
  0x11   :  { %562 = vmatpush3.msra.mxu1 %v62_v1  ;;  %638 = vmatpush3.xpose.msra.mxu0 %v54_v3  ;;  %v52_v6 = vld [vmem:[#allocation2 + $0x68] sm:$0xff]  ;;  %v50_v9 = vld [vmem:[#allocation2 + $0x58] sm:$0xff]  ;;  %v49_v10 = vld [vmem:[#allocation2 + $0x50] sm:$0xff] }
  0x12   :  { %564 = vmatmul.mubr.msk.f32.vlgmr.msra.gmra.mxu1 %vm63_vm1, %v55_v2  ;;  %584 = vmatprep.subr.mxu1 %v771_v0  ;;  %v58_v11 = vld [vmem:[%s985_s1 + $0x18] sm:$0xff]  ;;  %v48_v12 = vld [vmem:[#allocation2 + $0x48] sm:$0xff]  ;;  %v47_v13 = vld [vmem:[#allocation2 + $0x40] sm:$0xff] }
  0x13   :  { %585 = vmatpush3.msra.mxu1 %v54_v3  ;;  %566 = vmatprep.mubr.msk.f32.mxu1 %vm772_vm0, %v771_v0  ;;  %v59_v14 = vld [vmem:[%s985_s1 + $0x20] sm:$0xff]  ;;  %v46_v15 = vld [vmem:[#allocation2 + $0x38] sm:$0xff]  ;;  %v45_v16 = vld [vmem:[#allocation2 + $0x30] sm:$0xff] }
  0x14   :  { %586 = vmatprep.subr.mxu1 %v771_v0  ;;  %639 = vmatprep.subr.mxu0 %v771_v0  ;;  %v60_v17 = vld [vmem:[%s985_s1 + $0x28] sm:$0xff]  ;;  %v43_v19 = vld [vmem:[#allocation2 + $0x20] sm:$0xff]  ;;  %v61_v20 = vld [vmem:[%s985_s1 + $0x30] sm:$0x3] }
  0x15   :  { %587 = vmatpush3.msra.mxu1 %v53_v4  ;;  %640 = vmatpush3.xpose.msra.mxu0 %v53_v4  ;;  %v44_v18 = vld [vmem:[#allocation2 + $0x28] sm:$0xff]  ;;  %v42_v21 = vld [vmem:[#allocation2 + $0x18] sm:$0xff]  ;;  %v41_v22 = vld [vmem:[#allocation2 + $0x10] sm:$0xff] }
  0x16   :  { %588 = vmatprep.subr.mxu1 %v771_v0  ;;  %567 = vmatmul.mubr.msk.f32.gmra.mxu1 %vm63_vm1, %v56_v5  ;;  %v40_v23 = vld [vmem:[#allocation2 + $0x8] sm:$0xff]  ;;  %v39_v24 = vld [vmem:[#allocation2] sm:$0xff]  ;;  %v901_v27 = vld [vmem:[%s984_s0 + $0x10] sm:$0xff] }
  0x17   :  { %589 = vmatpush3.msra.mxu1 %v52_v6  ;;  %569 = vmatprep.mubr.msk.f32.mxu1 %vm772_vm0, %v771_v0  ;;  %v882_v25 = vld [vmem:[%s984_s0] sm:$0xff]  ;;  %v892_v26 = vld [vmem:[%s984_s0 + $0x8] sm:$0xff]  ;;  %v910_v28 = vld [vmem:[%s984_s0 + $0x18] sm:$0xff] }
  0x18   :  { %590 = vmatprep.subr.mxu1 %v771_v0  ;;  %641 = vmatprep.subr.mxu0 %v771_v0  ;;  %v919_v29 = vld [vmem:[%s984_s0 + $0x20] sm:$0xff]  ;;  %v928_v30 = vld [vmem:[%s984_s0 + $0x28] sm:$0xff]  ;;  %v937_v31 = vld [vmem:[%s984_s0 + $0x30] sm:$0x3]  ;;  %s773_s0 = smov [#allocation5]  }
  0x19   :  { %591 = vmatpush3.msra.mxu1 %v51_v7  ;;  %642 = vmatpush3.xpose.msra.mxu0 %v52_v6  ;;  %s474_s24 = sshll.u32 %s773_s0, 4  ;;  %s475_s24 = int_to_ptr.vmem [resolvable:$true] %s474_s24 }
  0x1a   :  { %592 = vmatprep.subr.mxu1 %v771_v0  ;;  %570 = vmatmul.mubr.msk.f32.gmra.mxu1 %vm63_vm1, %v57_v8  ;;  %s744_s25 = scalar_lea.vmem %s475_s24, 896  ;;  %p749_p6 = scmp.lt.s32.totalorder %s475_s24, %s475_s24 }
  0x1b   :  { %593 = vmatpush3.msra.mxu1 %v50_v9  ;;  %572 = vmatprep.mubr.msk.f32.mxu1 %vm772_vm0, %v771_v0  ;;  %p745_p5 = scmp.ne.s32.totalorder %s475_s24, %s744_s25  ;;  %p750_p7 = scmp.lt.s32.totalorder %s744_s25, %s744_s25 }
  0x1c   :  { %594 = vmatprep.subr.mxu1 %v771_v0  ;;  %643 = vmatprep.subr.mxu0 %v771_v0 }
  0x1d   :  { %595 = vmatpush3.msra.mxu1 %v49_v10  ;;  %644 = vmatpush3.xpose.msra.mxu0 %v51_v7  ;;  %p751_p8 = por %p750_p7, %p749_p6 }
  0x1e   :  { %596 = vmatprep.subr.mxu1 %v771_v0  ;;  %573 = vmatmul.mubr.msk.f32.gmra.mxu1 %vm63_vm1, %v58_v11 }
  0x1f   :  { %597 = vmatpush3.msra.mxu1 %v48_v12  ;;  %575 = vmatprep.mubr.msk.f32.mxu1 %vm772_vm0, %v771_v0  ;;  %p752_p9 = pnand %p751_p8, %p745_p5 }
  0x20   :  { %598 = vmatprep.subr.mxu1 %v771_v0  ;;  %645 = vmatprep.subr.mxu0 %v771_v0 }
  0x21   :  { %599 = vmatpush3.msra.mxu1 %v47_v13  ;;  %646 = vmatpush3.xpose.msra.mxu0 %v50_v9 }
  0x22   :  { %600 = vmatprep.subr.mxu1 %v771_v0  ;;  %576 = vmatmul.mubr.msk.f32.gmra.mxu1 %vm63_vm1, %v59_v14 }
  0x23   :  { %601 = vmatpush3.msra.mxu1 %v46_v15  ;;  %578 = vmatprep.mubr.msk.f32.mxu1 %vm772_vm0, %v771_v0 }
  0x24   :  { %602 = vmatprep.subr.mxu1 %v771_v0  ;;  %647 = vmatprep.subr.mxu0 %v771_v0 }
  0x25   :  { %603 = vmatpush3.msra.mxu1 %v45_v16  ;;  %648 = vmatpush3.xpose.msra.mxu0 %v49_v10 }
  0x26   :  { %604 = vmatprep.subr.mxu1 %v771_v0  ;;  %579 = vmatmul.mubr.msk.f32.gmra.mxu1 %vm63_vm1, %v60_v17 }
  0x27   :  { %605 = vmatpush3.msra.mxu1 %v44_v18  ;;  %581 = vmatprep.mubr.msk.f32.mxu1 %vm772_vm0, %v771_v0 }
  0x28   :  { %606 = vmatprep.subr.mxu1 %v771_v0  ;;  %649 = vmatprep.subr.mxu0 %v771_v0 }
  0x29   :  { %607 = vmatpush3.msra.mxu1 %v43_v19  ;;  %650 = vmatpush3.xpose.msra.mxu0 %v48_v12 }
  0x2a   :  { %608 = vmatprep.subr.mxu1 %v771_v0  ;;  %582 = vmatmul.mubr.msk.f32.gmra.mxu1 %vm63_vm1, %v61_v20 }
  0x2b   :  { %609 = vmatpush3.msra.mxu1 %v42_v21  ;;  %616 = vmatprep.mubr.msk.f32.mxu1 %vm772_vm0, %v771_v0 }
  0x2c   :  { %610 = vmatprep.subr.mxu1 %v771_v0  ;;  %651 = vmatprep.subr.mxu0 %v771_v0 }
  0x2d   :  { %611 = vmatpush3.msra.mxu1 %v41_v22  ;;  %652 = vmatpush3.xpose.msra.mxu0 %v47_v13 }
  0x2e   :  { %612 = vmatprep.subr.mxu1 %v771_v0  ;;  %653 = vmatprep.subr.mxu0 %v771_v0 }
  0x2f   :  { %613 = vmatpush3.msra.mxu1 %v40_v23 }
  0x30   :  { %614 = vmatprep.subr.mxu1 %v771_v0 }
  0x31   :  { %615 = vmatpush3.msra.mxu1 %v39_v24  ;;  %654 = vmatpush3.xpose.msra.mxu0 %v46_v15 }
  0x32   :  { %617 = vmatmul.mubr.f32.vlgmr.msra.gmra.mxu1 %v882_v25  ;;  %655 = vmatprep.subr.mxu0 %v771_v0 }
  0x33   :  { %619 = vmatprep.mubr.msk.f32.mxu1 %vm772_vm0, %v771_v0 }
  0x35   :  { %656 = vmatpush3.xpose.msra.mxu0 %v45_v16 }
  0x36   :  { %620 = vmatmul.mubr.f32.gmra.mxu1 %v892_v26  ;;  %657 = vmatprep.subr.mxu0 %v771_v0 }
  0x37   :  { %622 = vmatprep.mubr.msk.f32.mxu1 %vm772_vm0, %v771_v0 }
  0x39   :  { %658 = vmatpush3.xpose.msra.mxu0 %v44_v18 }
  0x3a   :  { %623 = vmatmul.mubr.f32.gmra.mxu1 %v901_v27  ;;  %659 = vmatprep.subr.mxu0 %v771_v0 }
  0x3b   :  { %625 = vmatprep.mubr.msk.f32.mxu1 %vm772_vm0, %v771_v0 }
  0x3d   :  { %660 = vmatpush3.xpose.msra.mxu0 %v43_v19 }
  0x3e   :  { %626 = vmatmul.mubr.f32.gmra.mxu1 %v910_v28  ;;  %661 = vmatprep.subr.mxu0 %v771_v0 }
  0x3f   :  { %628 = vmatprep.mubr.msk.f32.mxu1 %vm772_vm0, %v771_v0 }
  0x41   :  { %662 = vmatpush3.xpose.msra.mxu0 %v42_v21 }
  0x42   :  { %629 = vmatmul.mubr.f32.gmra.mxu1 %v919_v29  ;;  %663 = vmatprep.subr.mxu0 %v771_v0 }
  0x43   :  { %631 = vmatprep.mubr.msk.f32.mxu1 %vm772_vm0, %v771_v0 }
  0x45   :  { %664 = vmatpush3.xpose.msra.mxu0 %v41_v22 }
  0x46   :  { %632 = vmatmul.mubr.f32.gmra.mxu1 %v928_v30  ;;  %665 = vmatprep.subr.mxu0 %v771_v0 }
  0x47   :  { %634 = vmatprep.mubr.msk.f32.mxu1 %vm772_vm0, %v771_v0 }
  0x49   :  { %666 = vmatpush3.xpose.msra.mxu0 %v40_v23 }
  0x4a   :  { %635 = vmatmul.mubr.f32.gmra.mxu1 %v937_v31  ;;  %667 = vmatprep.subr.mxu0 %v771_v0 }
  0x4d   :  { %668 = vmatpush3.xpose.msra.mxu0 %v39_v24 }
  0xd2   :  { %v151_v32 = vpop.f32.mrf.mxu1 }
  0xd3   :  { %vm334_vm2 = vcmp.gt.f32.partialorder %v151_v32, 0.0 }
  0xd4   :  { %v565_v33 = vpop.f32.mrf.mxu1 }
  0xd6   :  { %v941_v34 = vpop.f32.mrf.mxu1 }
  0xd7   :  { %vm335_vm5 = vcmp.gt.f32.partialorder %v941_v34, 0.0 }
  0xd8   :  { %v568_v35 = vpop.f32.mrf.mxu1 }
  0xda   :  { %v943_v36 = vpop.f32.mrf.mxu1 }
  0xdb   :  { %vm336_vm8 = vcmp.gt.f32.partialorder %v943_v36, 0.0 }
  0xdc   :  { %v571_v37 = vpop.f32.mrf.mxu1 }
  0xde   :  { %v945_v38 = vpop.f32.mrf.mxu1 }
  0xdf   :  { %vm337_vm11 = vcmp.gt.f32.partialorder %v945_v38, 0.0 }
  0xe0   :  { %v574_v39 = vpop.f32.mrf.mxu1 }
  0xe2   :  { %v947_v40 = vpop.f32.mrf.mxu1 }
  0xe3   :  { %vm338_vm14 = vcmp.gt.f32.partialorder %v947_v40, 0.0 }
  0xe4   :  { %v577_v41 = vpop.f32.mrf.mxu1 }
  0xe6   :  { %v949_v42 = vpop.f32.mrf.mxu1 }
  0xe8   :  { %v580_v43 = vpop.f32.mrf.mxu1 }
  0xea   :  { %v951_v44 = vpop.f32.mrf.mxu1 }
  0xec   :  { %v583_v45 = vpop.f32.mrf.mxu1 }
  0xf2   :  { %v251_v46 = vpop.f32.mrf.mxu1 }
  0xf3   :  { %v493_v47 = vmul.f32 -1.442695, %v251_v46 }
  0xf4   :  { %v618_v48 = vpop.f32.mrf.mxu1 }
  0xf5   :  { %696 = vpow2.f32 %v493_v47 }
  0xf6   :  { %v256_v49 = vpop.f32.mrf.mxu1 }
  0xf7   :  { %v494_v50 = vmul.f32 -1.442695, %v256_v49 }
  0xf8   :  { %v621_v51 = vpop.f32.mrf.mxu1 }
  0xf9   :  { %698 = vpow2.f32 %v494_v50 }
  0xfa   :  { %v261_v52 = vpop.f32.mrf.mxu1 }
  0xfb   :  { %v495_v53 = vmul.f32 -1.442695, %v261_v52 }
  0xfc   :  { %v624_v54 = vpop.f32.mrf.mxu1 }
  0xfd   :  { %700 = vpow2.f32 %v495_v53 }
  0xfe   :  { %v266_v55 = vpop.f32.mrf.mxu1 }
  0xff   :  { %v496_v56 = vmul.f32 -1.442695, %v266_v55 }
 0x100   :  { %v627_v57 = vpop.f32.mrf.mxu1 }
 0x101   :  { %702 = vpow2.f32 %v496_v56 }
 0x102   :  { %v697_v58 = vpop.eup %696  ;;  %v271_v59 = vpop.f32.mrf.mxu1 }
 0x103   :  { %v306_v60 = vadd.f32 1.0, %v697_v58  ;;  %v497_v61 = vmul.f32 -1.442695, %v271_v59 }
 0x104   :  { %v630_v62 = vpop.f32.mrf.mxu1 }
 0x105   :  { %704 = vrcp.f32 %v306_v60 }
 0x106   :  { %v699_v63 = vpop.eup %698  ;;  %706 = vpow2.f32 %v497_v61  ;;  %v276_v1 = vpop.f32.mrf.mxu1 }
 0x107   :  { %v307_v2 = vadd.f32 1.0, %v699_v63  ;;  %v498_v3 = vmul.f32 -1.442695, %v276_v1 }
 0x108   :  { %v633_v4 = vpop.f32.mrf.mxu1 }
 0x109   :  { %708 = vrcp.f32 %v307_v2 }
 0x10a   :  { %v701_v5 = vpop.eup %700  ;;  %710 = vpow2.f32 %v498_v3  ;;  %v281_v6 = vpop.f32.mrf.mxu1 }
 0x10b   :  { %v308_v7 = vadd.f32 1.0, %v701_v5  ;;  %v499_v8 = vmul.f32 -1.442695, %v281_v6 }
 0x10c   :  { %v636_v9 = vpop.f32.mrf.mxu1 }
 0x10d   :  { %712 = vrcp.f32 %v308_v7 }
 0x10e   :  { %v703_v10 = vpop.eup %702  ;;  %714 = vpow2.f32 %v499_v8 }
 0x10f   :  { %v309_v11 = vadd.f32 1.0, %v703_v10 }
 0x111   :  { %716 = vrcp.f32 %v309_v11 }
 0x112   :  { %v705_v12 = vpop.eup %704 }
 0x113   :  { %v707_v13 = vpop.eup %706  ;;  %vm327_vm3 = vcmp.gt.f32.partialorder %v705_v12, 0.5 }
 0x114   :  { %v310_v14 = vadd.f32 1.0, %v707_v13  ;;  %vm341_vm4 = vmand %vm327_vm3, %vm334_vm2  ;;  %vm339_vm2 = vcmp.gt.f32.partialorder %v949_v42, 0.0 }
 0x115   :  { %670 = vmatmul.mubr.msk.f32.vlgmr.msra.gmra.mxu0 %vm341_vm4, %v705_v12 }
 0x116   :  { %v709_v15 = vpop.eup %708  ;;  %718 = vrcp.f32 %v310_v14  ;;  %672 = vmatprep.mubr.msk.f32.mxu0 %vm772_vm0, %v771_v0 }
 0x117   :  { %v711_v16 = vpop.eup %710  ;;  %vm328_vm6 = vcmp.gt.f32.partialorder %v709_v15, 0.5 }
 0x118   :  { %v311_v17 = vadd.f32 1.0, %v711_v16  ;;  %vm342_vm7 = vmand %vm328_vm6, %vm335_vm5  ;;  %vm340_vm5 = vcmp.gt.f32.partialorder %v951_v44, 0.0 }
 0x119   :  { %673 = vmatmul.mubr.msk.f32.gmra.mxu0 %vm342_vm7, %v709_v15 }
 0x11a   :  { %v713_v18 = vpop.eup %712  ;;  %720 = vrcp.f32 %v311_v17  ;;  %675 = vmatprep.mubr.msk.f32.mxu0 %vm772_vm0, %v771_v0 }
 0x11b   :  { %v715_v19 = vpop.eup %714  ;;  %vm329_vm9 = vcmp.gt.f32.partialorder %v713_v18, 0.5 }
 0x11c   :  { %v312_v20 = vadd.f32 1.0, %v715_v19  ;;  %vm343_vm10 = vmand %vm329_vm9, %vm336_vm8 }
 0x11d   :  { %676 = vmatmul.mubr.msk.f32.gmra.mxu0 %vm343_vm10, %v713_v18 }
 0x11e   :  { %v717_v21 = vpop.eup %716  ;;  %722 = vrcp.f32 %v312_v20  ;;  %678 = vmatprep.mubr.msk.f32.mxu0 %vm772_vm0, %v771_v0 }
 0x11f   :  { %vm330_vm12 = vcmp.gt.f32.partialorder %v717_v21, 0.5 }
 0x120   :  { %vm344_vm13 = vmand %vm330_vm12, %vm337_vm11 }
 0x121   :  { %679 = vmatmul.mubr.msk.f32.gmra.mxu0 %vm344_vm13, %v717_v21 }
 0x122   :  { %681 = vmatprep.mubr.msk.f32.mxu0 %vm772_vm0, %v771_v0 }
 0x123   :  { %v719_v22 = vpop.eup %718 }
 0x124   :  { %vm331_vm15 = vcmp.gt.f32.partialorder %v719_v22, 0.5 }
 0x125   :  { %vm345_vm1 = vmand %vm331_vm15, %vm338_vm14 }
 0x126   :  { %682 = vmatmul.mubr.msk.f32.gmra.mxu0 %vm345_vm1, %v719_v22 }
 0x127   :  { %v721_v23 = vpop.eup %720  ;;  %684 = vmatprep.mubr.msk.f32.mxu0 %vm772_vm0, %v771_v0 }
 0x128   :  { %vm332_vm3 = vcmp.gt.f32.partialorder %v721_v23, 0.5 }
 0x129   :  { %vm346_vm4 = vmand %vm332_vm3, %vm339_vm2 }
 0x12a   :  { %685 = vmatmul.mubr.msk.f32.gmra.mxu0 %vm346_vm4, %v721_v23 }
 0x12b   :  { %v723_v24 = vpop.eup %722  ;;  %687 = vmatprep.mubr.msk.f32.mxu0 %vm772_vm0, %v771_v0 }
 0x12c   :  { %vm333_vm6 = vcmp.gt.f32.partialorder %v723_v24, 0.5 }
 0x12d   :  { %vm347_vm7 = vmand %vm333_vm6, %vm340_vm5 }
 0x12e   :  { %688 = vmatmul.mubr.msk.f32.gmra.mxu0 %vm347_vm7, %v723_v24 }
 0x1d5   :  { %v421_v32 = vpop.f32.mrf.mxu0 }
 0x1d6   :  { %v455_v33 = vadd.f32 %v421_v32, %v882_v25 }
 0x1d7   :  { %v671_v34 = vpop.f32.mrf.mxu0 }
 0x1d8   :  { %462 = vst [vmem:[#allocation5] sm:$0xff] %v455_v33 }
 0x1d9   :  { %v426_v35 = vpop.f32.mrf.mxu0 }
 0x1da   :  { %v456_v36 = vadd.f32 %v426_v35, %v892_v26 }
 0x1db   :  { %v674_v37 = vpop.f32.mrf.mxu0 }
 0x1dc   :  { %463 = vst [vmem:[#allocation5 + $0x8] sm:$0xff] %v456_v36 }
 0x1dd   :  { %v431_v38 = vpop.f32.mrf.mxu0 }
 0x1de   :  { %v457_v39 = vadd.f32 %v431_v38, %v901_v27 }
 0x1df   :  { %v677_v40 = vpop.f32.mrf.mxu0 }
 0x1e0   :  { %464 = vst [vmem:[#allocation5 + $0x10] sm:$0xff] %v457_v39 }
 0x1e1   :  { %v436_v0 = vpop.f32.mrf.mxu0 }
 0x1e2   :  { %v458_v41 = vadd.f32 %v436_v0, %v910_v28 }
 0x1e3   :  { %v680_v42 = vpop.f32.mrf.mxu0 }
 0x1e4   :  { %465 = vst [vmem:[#allocation5 + $0x18] sm:$0xff] %v458_v41 }
 0x1e6   :  { %v441_v43 = vpop.f32.mrf.mxu0 }
 0x1e7   :  { %v459_v25 = vadd.f32 %v441_v43, %v919_v29 }
 0x1e8   :  { %v683_v44 = vpop.f32.mrf.mxu0 }
 0x1e9   :  { %466 = vst [vmem:[#allocation5 + $0x20] sm:$0xff] %v459_v25 }
 0x1ea   :  { %v446_v45 = vpop.f32.mrf.mxu0 }
 0x1eb   :  { %v460_v26 = vadd.f32 %v446_v45, %v928_v30 }
 0x1ec   :  { %v686_v46 = vpop.f32.mrf.mxu0 }
 0x1ed   :  { %467 = vst [vmem:[#allocation5 + $0x28] sm:$0xff] %v460_v26 }
 0x1ee   :  { %v451_v27 = vpop.f32.mrf.mxu0 }
 0x1ef   :  { %v461_v47 = vadd.f32 %v451_v27, %v937_v31 }
 0x1f0   :  { %v689_v48 = vpop.f32.mrf.mxu0 }
 0x1f1   :  { %468 = vst [vmem:[#allocation5 + $0x30] sm:$0x3] %v461_v47 }
 0x1f2   :  { %755 = shalt.err (!%p752_p9)
}
 0x1f3   :  { %480 = dma.vmem_to_hbm [thread:$0]  %s475_s24, 896, %s988_s4, [#allocation4], %s769_s18, %s769_s18, %s770_s19  }
 0x1f4   :  { %766 = dma.done.wait [#allocation4], 896  }
 0x1f5   :  { %767 = vsyncadd [#allocation4], 4294966400 }
 0x1f6   :  { %484 = vsyncpa [#allocation3], 1 }
 0x1f7   :  { %485 = vsyncpa [#allocation4], 1 }

</bundles_post_ra>
